<compile_context>
chip_gen: v7x
topology: tpu7x:2x2x1
jax: 0.10.0
libtpu: 0.0.40
codegen_flags: <defaults>
</compile_context>

<pallas_src>
import functools

import jax
import jax.numpy as jnp
import numpy as np
from jax.experimental import pallas as pl
from jax.experimental.pallas import tpu as pltpu

NEG_SLOPE = 0.01  # F.leaky_relu default negative_slope


def kgat_kernel(rmap_ref, bid_ref, cnt_ref,            # scalar prefetch (SMEM)
                a_ref, h_rows_ref, h_nb_ref, w_ref,    # inputs (VMEM)
                o_ref,                                  # output (VMEM)
                acc_ref,                                # scratch: f32 accumulator
                *, tk, h_resident):
    # a_ref      : (tm, tk)      bf16 adjacency block (rows = this node tile)
    # h_rows_ref : (tm, D_in)    f32 features of this node tile (Bi residual term)
    # h_nb_ref   : (N, D_in) bf16 resident features, or (tk, D_in) bf16 block
    # w_ref      : (D_in, D_out) bf16 res_fc_2 weight, transposed
    # acc_ref    : (tm, D_in)    f32 running A @ h partial sum
    del rmap_ref  # consumed by the index_maps only
    i = pl.program_id(0)
    k = pl.program_id(1)

    @pl.when(k == 0)
    def _zero_acc():
        acc_ref[...] = jnp.zeros_like(acc_ref)

    # Only the first cnt_ref[i] steps along k map to nonzero adjacency blocks;
    # padded slots (up to k_max) repeat the previous block index (no re-DMA)
    # and skip the MXU work entirely.
    @pl.when(k < cnt_ref[i])
    def _accumulate():
        if h_resident:
            bid = bid_ref[i * pl.num_programs(1) + k]
            start = pl.multiple_of(bid * tk, tk)
            h_blk = h_nb_ref[pl.ds(start, tk), :]
        else:
            h_blk = h_nb_ref[...]
        acc_ref[...] += jnp.dot(a_ref[...], h_blk,
                                preferred_element_type=jnp.float32)

    @pl.when(k == pl.num_programs(1) - 1)
    def _finalize():
        # Bi residual: leaky_relu((h * h_neighbor) @ W2^T), bias-free.
        z = (h_rows_ref[...] * acc_ref[...]).astype(jnp.bfloat16)
        y = jnp.dot(z, w_ref[...], preferred_element_type=jnp.float32)
        o_ref[...] = jnp.maximum(y, NEG_SLOPE * y).astype(o_ref.dtype)


def prepare_kgat_graph(adj, *, tm, tk):
    """One-time, cacheable preprocessing of the (static) KGAT adjacency.

    Hoisted out of the per-call path so the N^2 bf16 cast and the dense
    block-sparsity scan are paid once per graph, not per layer / step.
    """
    N = adj.shape[0]
    assert adj.shape == (N, N)
    tm = min(tm, N)
    tk = min(tk, N)
    assert N % tm == 0 and N % tk == 0, "N must be divisible by tm and tk"
    n_rt, n_cb = N // tm, N // tk

    adj_np = np.asarray(adj)
    blk_nz = adj_np.reshape(n_rt, tm, n_cb, tk).any(axis=(1, 3))   # [n_rt, n_cb]
    counts = blk_nz.sum(axis=1).astype(np.int32)                   # [n_rt]
    k_max = max(int(counts.max()), 1)

    # Per row tile: nonzero column-block indices first (ascending); padded
    # slots repeat the last valid index so the pipeline sees an unchanged
    # block index and skips the DMA.
    block_ids = np.zeros((n_rt, k_max), dtype=np.int32)
    for r in range(n_rt):
        nz = np.nonzero(blk_nz[r])[0].astype(np.int32)
        if nz.size:
            block_ids[r, :nz.size] = nz
            block_ids[r, nz.size:] = nz[-1]

    # Row-tile permutation: greedily balance the total nonzero blocks between
    # the two contiguous halves of the parallel node axis (v7x megacore halves;
    # harmless reordering on single-TensorCore v5e/v6e).
    cap_a = (n_rt + 1) // 2
    half_a, half_b = [], []
    sum_a = sum_b = 0
    for r in np.argsort(-counts, kind="stable"):
        r = int(r)
        a_open = len(half_a) < cap_a
        b_open = len(half_b) < (n_rt - cap_a)
        if a_open and (not b_open or sum_a <= sum_b):
            half_a.append(r)
            sum_a += int(counts[r])
        else:
            half_b.append(r)
            sum_b += int(counts[r])
    row_perm = np.asarray(half_a + half_b, dtype=np.int32)

    return dict(
        adj_bf16=jnp.asarray(adj, jnp.bfloat16),
        row_perm=jnp.asarray(row_perm),
        block_ids=jnp.asarray(block_ids[row_perm].reshape(-1)),
        counts=jnp.asarray(counts[row_perm]),
        tm=tm, tk=tk, n_rt=n_rt, k_max=k_max,
        nnz_blocks=int(counts.sum()),
        N=N,
    )


def kgat_conv(graph, h, w2, *, h_resident_budget_bytes=24 * 1024 * 1024):
    """graph: output of prepare_kgat_graph.  h: [N, D_in] node features.
    w2: [D_out, D_in] nn.Linear weight (bias=False).  Returns [N, D_out]."""
    N, D_in = h.shape
    D_out = w2.shape[0]
    assert N == graph["N"]
    tm, tk = graph["tm"], graph["tk"]
    n_rt, k_max = graph["n_rt"], graph["k_max"]

    # bf16 operands for both matmuls (f32 MXU accumulation); h stays f32 for
    # the elementwise Bi residual term.
    h_bf16 = h.astype(jnp.bfloat16)
    w_t = w2.T.astype(jnp.bfloat16)                      # [D_in, D_out]

    # Keep the bf16 feature matrix VMEM-resident when it fits (removes the
    # per-nonzero-block h re-fetch); otherwise stream (tk, D_in) blocks.
    # NOTE: for best writeback/MXU efficiency D_out (and D_in) should be a
    # multiple of 128; pad or batch heads/layers into the last dim otherwise.
    h_resident = 2 * N * D_in * 2 <= h_resident_budget_bytes

    out_itemsize = jnp.dtype(h.dtype).itemsize
    vmem_needed = (
        2 * tm * tk * 2                                   # adjacency blocks (bf16)
        + 2 * tm * D_in * 4                               # h row tile (f32)
        + 2 * (N if h_resident else tk) * D_in * 2        # neighbor features (bf16)
        + 2 * D_in * D_out * 2                            # W2^T (bf16)
        + 2 * tm * D_out * out_itemsize                   # output tile
        + tm * D_in * 4                                   # accumulator scratch
    )
    vmem_limit = int(min(max(2 * vmem_needed + (4 << 20), 16 << 20), 100 << 20))

    cost = pl.CostEstimate(
        flops=2 * graph["nnz_blocks"] * tm * tk * D_in + 2 * N * D_in * D_out,
        transcendentals=0,
        bytes_accessed=int(graph["nnz_blocks"] * tm * tk * 2
                           + N * D_in * (2 + 4)
                           + D_in * D_out * 2
                           + N * D_out * out_itemsize),
    )

    def adj_map(i, k, rmap, bid, cnt):
        return (rmap[i], bid[i * k_max + k])

    def rows_map(i, k, rmap, bid, cnt):
        return (rmap[i], 0)

    if h_resident:
        h_nb_spec = pl.BlockSpec((N, D_in), lambda i, k, rmap, bid, cnt: (0, 0))
    else:
        h_nb_spec = pl.BlockSpec(
            (tk, D_in), lambda i, k, rmap, bid, cnt: (bid[i * k_max + k], 0))

    kernel = functools.partial(kgat_kernel, tk=tk, h_resident=h_resident)

    return pl.pallas_call(
        kernel,
        out_shape=jax.ShapeDtypeStruct((N, D_out), h.dtype),
        grid_spec=pltpu.PrefetchScalarGridSpec(
            num_scalar_prefetch=3,
            grid=(n_rt, k_max),
            in_specs=[
                pl.BlockSpec((tm, tk), adj_map),      # adjacency block (bf16)
                pl.BlockSpec((tm, D_in), rows_map),   # h rows (f32, residual term)
                h_nb_spec,                            # neighbor features (bf16)
                pl.BlockSpec((D_in, D_out),
                             lambda i, k, rmap, bid, cnt: (0, 0)),   # W2^T (bf16)
            ],
            out_specs=pl.BlockSpec((tm, D_out), rows_map),
            scratch_shapes=[pltpu.VMEM((tm, D_in), jnp.float32)],
        ),
        compiler_params=pltpu.CompilerParams(
            dimension_semantics=("parallel", "arbitrary"),
            vmem_limit_bytes=vmem_limit,
        ),
        cost_estimate=cost,
    )(graph["row_perm"], graph["block_ids"], graph["counts"],
      graph["adj_bf16"], h, h_bf16, w_t)


def kgat_conv_ref(adj, h, w2):
    h_neighbor = adj @ h
    y = (h * h_neighbor) @ w2.T
    return jnp.where(y > 0, y, NEG_SLOPE * y)


if __name__ == "__main__":
    # Small synthetic graph: 512 nodes, 128-dim entity features, 128-dim output.
    N, D_IN, D_OUT = 512, 128, 128
    TM, TK = 128, 128  # small tiles for the demo; larger graphs want bigger tm
    key = jax.random.PRNGKey(0)
    k_feat, k_w, k_adj, k_emask, k_bmask = jax.random.split(key, 5)

    # Node features
    h = jax.random.normal(k_feat, (N, D_IN), dtype=jnp.float32)

    # Deterministic "parameter init" for res_fc_2 (nn.Linear(D_IN, D_OUT, bias=False)).
    bound = 1.0 / jnp.sqrt(jnp.float32(D_IN))
    w2 = jax.random.uniform(k_w, (D_OUT, D_IN), dtype=jnp.float32,
                            minval=-bound, maxval=bound)

    # Sparse weighted adjacency: ~10% edges inside blocks, plus block-level
    # sparsity (~50% of (TM, TK) blocks fully zero) so the scalar-prefetched
    # block-skipping path is actually exercised.
    raw_w = jax.random.uniform(k_adj, (N, N), dtype=jnp.float32)
    edge_mask = (jax.random.uniform(k_emask, (N, N)) < 0.1).astype(jnp.float32)
    block_mask = (jax.random.uniform(k_bmask, (N // TM, N // TK)) < 0.5
                  ).astype(jnp.float32)
    block_mask_full = jnp.kron(block_mask, jnp.ones((TM, TK), jnp.float32))
    adj = raw_w * edge_mask * block_mask_full  # adj[v, u] = w(u -> v)

    # One-time graph preprocessing (cache across layers/steps in real KGAT).
    graph = prepare_kgat_graph(adj, tm=TM, tk=TK)

    out = kgat_conv(graph, h, w2)
    out = jax.block_until_ready(out)

    ref = kgat_conv_ref(adj, h, w2)
    assert out.shape == (N, D_OUT)
    # Looser tolerance: both matmuls use bf16 operands (f32 accumulation).
    assert jnp.allclose(out, ref, atol=5e-2, rtol=5e-2), "mismatch vs reference"

    print("KERNEL_OK")
</pallas_src>

<mosaic_0001>
module attributes {stable_mosaic.version = 11 : i64} {
  func.func @kgat_kernel(%arg0: i32, %arg1: i32, %arg2: memref<4xi32, #tpu.memory_space<smem>>, %arg3: memref<12xi32, #tpu.memory_space<smem>>, %arg4: memref<4xi32, #tpu.memory_space<smem>>, %arg5: memref<128x128xbf16, #tpu.memory_space<vmem>>, %arg6: memref<128x128xf32, #tpu.memory_space<vmem>>, %arg7: memref<512x128xbf16, #tpu.memory_space<vmem>>, %arg8: memref<128x128xbf16, #tpu.memory_space<vmem>>, %arg9: memref<128x128xf32, #tpu.memory_space<vmem>>, %arg10: memref<128x128xf32, #tpu.memory_space<vmem>>) attributes {dimension_semantics = [#tpu.dimension_semantics<parallel>, #tpu.dimension_semantics<arbitrary>], iteration_bounds = array<i64: 4, 3>, scalar_prefetch = 3 : i64, scratch_operands = 1 : i64, tpu.core_type = #tpu.core_type<tc>, window_params = [{transform_indices = @transform_0, window_bounds = array<i64: 128, 128>}, {transform_indices = @transform_1, window_bounds = array<i64: 128, 128>}, {pipeline_mode = #tpu.pipeline_mode<synchronous>, transform_indices = @transform_2, window_bounds = array<i64: 512, 128>}, {pipeline_mode = #tpu.pipeline_mode<synchronous>, transform_indices = @transform_3, window_bounds = array<i64: 128, 128>}, {transform_indices = @transform_4, window_bounds = array<i64: 128, 128>}]} {
    %c0_i32 = arith.constant 0 : i32
    %0 = arith.cmpi eq, %arg1, %c0_i32 : i32
    %1 = arith.extui %0 : i1 to i32
    %c0_i32_0 = arith.constant 0 : i32
    %2 = arith.cmpi ne, %1, %c0_i32_0 : i32
    scf.if %2 {
      %cst = arith.constant 0.000000e+00 : f32
      %11 = vector.broadcast %cst : f32 to vector<128x128xf32>
      %c0 = arith.constant 0 : index
      %c0_3 = arith.constant 0 : index
      %12 = vector.load %arg10[%c0, %c0_3] : memref<128x128xf32, #tpu.memory_space<vmem>>, vector<128x128xf32>
      tpu.vector_store %arg10[%c0, %c0_3], %11 {strides = array<i32>} : memref<128x128xf32, #tpu.memory_space<vmem>>, vector<128x128xf32>,
    } else {
    }
    %3 = arith.index_cast %arg0 : i32 to index
    %4 = memref.load %arg4[%3] : memref<4xi32, #tpu.memory_space<smem>>
    %5 = arith.cmpi slt, %arg1, %4 : i32
    %6 = arith.extui %5 : i1 to i32
    %c0_i32_1 = arith.constant 0 : i32
    %7 = arith.cmpi ne, %6, %c0_i32_1 : i32
    scf.if %7 {
      %c3_i32 = arith.constant 3 : i32
      %11 = arith.muli %arg0, %c3_i32 : i32
      %12 = arith.addi %11, %arg1 : i32
      %13 = arith.index_cast %12 : i32 to index
      %14 = memref.load %arg3[%13] : memref<12xi32, #tpu.memory_space<smem>>
      %c128_i32 = arith.constant 128 : i32
      %15 = arith.muli %14, %c128_i32 : i32
      %16 = tpu.assume_multiple %15, 128 : i32
      %17 = arith.index_cast %16 : i32 to index
      %c0 = arith.constant 0 : index
      %18 = vector.load %arg7[%17, %c0] : memref<512x128xbf16, #tpu.memory_space<vmem>>, vector<128x128xbf16>
      %c0_3 = arith.constant 0 : index
      %c0_4 = arith.constant 0 : index
      %19 = vector.load %arg10[%c0_3, %c0_4] : memref<128x128xf32, #tpu.memory_space<vmem>>, vector<128x128xf32>
      %c0_5 = arith.constant 0 : index
      %c0_6 = arith.constant 0 : index
      %20 = vector.load %arg5[%c0_5, %c0_6] : memref<128x128xbf16, #tpu.memory_space<vmem>>, vector<128x128xbf16>
      %cst = arith.constant dense<0.000000e+00> : vector<128x128xf32>
      %21 = tpu.matmul %20, %18, %cst {dimension_numbers = #tpu.dot_dimension_numbers<[1], [0], [0], [1], [0, 0, 1, 1], [], []>} : vector<128x128xbf16>, vector<128x128xbf16>, vector<128x128xf32> -> vector<128x128xf32>
      %22 = arith.addf %19, %21 : vector<128x128xf32>
      %c0_7 = arith.constant 0 : index
      %c0_8 = arith.constant 0 : index
      %23 = vector.load %arg10[%c0_7, %c0_8] : memref<128x128xf32, #tpu.memory_space<vmem>>, vector<128x128xf32>
      tpu.vector_store %arg10[%c0_7, %c0_8], %22 {strides = array<i32>} : memref<128x128xf32, #tpu.memory_space<vmem>>, vector<128x128xf32>,
    } else {
    }
    %c2_i32 = arith.constant 2 : i32
    %8 = arith.cmpi eq, %arg1, %c2_i32 : i32
    %9 = arith.extui %8 : i1 to i32
    %c0_i32_2 = arith.constant 0 : i32
    %10 = arith.cmpi ne, %9, %c0_i32_2 : i32
    scf.if %10 {
      %c0 = arith.constant 0 : index
      %c0_3 = arith.constant 0 : index
      %11 = vector.load %arg6[%c0, %c0_3] : memref<128x128xf32, #tpu.memory_space<vmem>>, vector<128x128xf32>
      %c0_4 = arith.constant 0 : index
      %c0_5 = arith.constant 0 : index
      %12 = vector.load %arg10[%c0_4, %c0_5] : memref<128x128xf32, #tpu.memory_space<vmem>>, vector<128x128xf32>
      %13 = arith.mulf %11, %12 : vector<128x128xf32>
      %14 = arith.truncf %13 : vector<128x128xf32> to vector<128x128xbf16>
      %c0_6 = arith.constant 0 : index
      %c0_7 = arith.constant 0 : index
      %15 = vector.load %arg8[%c0_6, %c0_7] : memref<128x128xbf16, #tpu.memory_space<vmem>>, vector<128x128xbf16>
      %cst = arith.constant dense<0.000000e+00> : vector<128x128xf32>
      %16 = tpu.matmul %14, %15, %cst {dimension_numbers = #tpu.dot_dimension_numbers<[1], [0], [0], [1], [0, 0, 1, 1], [], []>} : vector<128x128xbf16>, vector<128x128xbf16>, vector<128x128xf32> -> vector<128x128xf32>
      %cst_8 = arith.constant 0.00999999977 : f32
      %17 = vector.broadcast %cst_8 : f32 to vector<128x128xf32>
      %18 = arith.mulf %17, %16 : vector<128x128xf32>
      %19 = arith.maximumf %16, %18 : vector<128x128xf32>
      %c0_9 = arith.constant 0 : index
      %c0_10 = arith.constant 0 : index
      %20 = vector.load %arg9[%c0_9, %c0_10] : memref<128x128xf32, #tpu.memory_space<vmem>>, vector<128x128xf32>
      tpu.vector_store %arg9[%c0_9, %c0_10], %19 {strides = array<i32>} : memref<128x128xf32, #tpu.memory_space<vmem>>, vector<128x128xf32>,
    } else {
    }
    return
  }
  func.func @transform_0(%arg0: i32, %arg1: i32, %arg2: memref<4xi32, #tpu.memory_space<smem>>, %arg3: memref<12xi32, #tpu.memory_space<smem>>, %arg4: memref<4xi32, #tpu.memory_space<smem>>) -> (i32, i32) {
    %0 = arith.index_cast %arg0 : i32 to index
    %1 = memref.load %arg2[%0] : memref<4xi32, #tpu.memory_space<smem>>
    %c3_i32 = arith.constant 3 : i32
    %2 = arith.muli %arg0, %c3_i32 : i32
    %3 = arith.addi %2, %arg1 : i32
    %4 = arith.index_cast %3 : i32 to index
    %5 = memref.load %arg3[%4] : memref<12xi32, #tpu.memory_space<smem>>
    %c0_i32 = arith.constant 0 : i32
    return %1, %5 : i32, i32
  }
  func.func @transform_1(%arg0: i32, %arg1: i32, %arg2: memref<4xi32, #tpu.memory_space<smem>>, %arg3: memref<12xi32, #tpu.memory_space<smem>>, %arg4: memref<4xi32, #tpu.memory_space<smem>>) -> (i32, i32) {
    %0 = arith.index_cast %arg0 : i32 to index
    %1 = memref.load %arg2[%0] : memref<4xi32, #tpu.memory_space<smem>>
    %c0_i32 = arith.constant 0 : i32
    %c0_i32_0 = arith.constant 0 : i32
    return %1, %c0_i32 : i32, i32
  }
  func.func @transform_2(%arg0: i32, %arg1: i32, %arg2: memref<4xi32, #tpu.memory_space<smem>>, %arg3: memref<12xi32, #tpu.memory_space<smem>>, %arg4: memref<4xi32, #tpu.memory_space<smem>>) -> (i32, i32) {
    %c0_i32 = arith.constant 0 : i32
    %c0_i32_0 = arith.constant 0 : i32
    %c0_i32_1 = arith.constant 0 : i32
    return %c0_i32, %c0_i32_0 : i32, i32
  }
  func.func @transform_3(%arg0: i32, %arg1: i32, %arg2: memref<4xi32, #tpu.memory_space<smem>>, %arg3: memref<12xi32, #tpu.memory_space<smem>>, %arg4: memref<4xi32, #tpu.memory_space<smem>>) -> (i32, i32) {
    %c0_i32 = arith.constant 0 : i32
    %c0_i32_0 = arith.constant 0 : i32
    %c0_i32_1 = arith.constant 0 : i32
    return %c0_i32, %c0_i32_0 : i32, i32
  }
  func.func @transform_4(%arg0: i32, %arg1: i32, %arg2: memref<4xi32, #tpu.memory_space<smem>>, %arg3: memref<12xi32, #tpu.memory_space<smem>>, %arg4: memref<4xi32, #tpu.memory_space<smem>>) -> (i32, i32) {
    %0 = arith.index_cast %arg0 : i32 to index
    %1 = memref.load %arg2[%0] : memref<4xi32, #tpu.memory_space<smem>>
    %c0_i32 = arith.constant 0 : i32
    %c0_i32_0 = arith.constant 0 : i32
    return %1, %c0_i32 : i32, i32
  }
}

</mosaic_0001>

<bundles_post_ra>
// kernel: tpu_custom_call.1
= control target key start
LH: loop header
LB: loop body
LE: loop exit
PB: predicated region body
PF: predicated region fallthrough
CT: control target
= control target key end

     0   :  { %s2361_s0 = inlined_call_operand.hbm [shape: s32[4], index: 0, kind: input, shape index: {}]   ;;  %s2362_s3 = inlined_call_operand.hbm [shape: bf16[512,512], index: 3, kind: input, shape index: {}]   ;;  %s2363_s4 = inlined_call_operand.hbm [shape: f32[512,128], index: 4, kind: input, shape index: {}]   ;;  %s2364_s5 = inlined_call_operand.hbm [shape: bf16[512,128], index: 5, kind: input, shape index: {}]   ;;  %s2365_s6 = inlined_call_operand.hbm [shape: bf16[128,128], index: 6, kind: input, shape index: {}]   ;;  %s2366_s7 = inlined_call_operand.hbm [shape: f32[512,128], index: 7, kind: output, shape index: {}]   ;;  %s2367_s1 = inlined_call_operand.vmem [shape: s32[12], index: 1, kind: input, shape index: {}]   ;;  %s2368_s2 = inlined_call_operand.vmem [shape: s32[4], index: 2, kind: input, shape index: {}]  }
   0x1   :  { %2396 = sst [smem:[#allocation40_spill]] %s2364_s5  ;;  %s1448_s26 = scalar_lea.hbm %s2361_s0, 16 }
   0x2   :  { %2397 = sst [smem:[#allocation41_spill]] %s2365_s6  ;;  %p1449_p0 = scmp.ne.s32.totalorder %s2361_s0, %s1448_s26 }
   0x3   :  { %2398 = sst [smem:[#allocation42_spill]] %s2366_s7  ;;  %p1452_p1 = scmp.lt.u32.totalorder %s1448_s26, %s2361_s0 }
   0x5   :  { %p1454_p2 = pnand %p1452_p1, %p1449_p0 }
   0x7   :  { %1457 = shalt.err (!%p1454_p2)  }
   0x8   :  { %s1760_s8 = smov [#allocation4]   ;;  %s14_s13 = sshll.u32 %s2367_s1, 4  ;;  %s15_s13 = int_to_ptr.vmem [resolvable:$true] %s14_s13 }
   0x9   :  { %13 = dma.hbm_to_smem %s2361_s0, 16, %s1760_s8, [#allocation3] }
   0xa   :  { %s18_s16 = sshll.u32 %s2368_s2, 4  ;;  %s1458_s17 = scalar_lea.vmem %s15_s13, 16  ;;  %s19_s16 = int_to_ptr.vmem [resolvable:$true] %s18_s16 }
   0xb   :  { %p1459_p3 = scmp.ne.s32.totalorder %s15_s13, %s1458_s17  ;;  %p1463_p4 = scmp.lt.s32.totalorder %s15_s13, %s15_s13 }
   0xc   :  { %p1464_p5 = scmp.lt.s32.totalorder %s1458_s17, %s1458_s17 }
   0xe   :  { %p1465_p6 = por %p1464_p5, %p1463_p4 }
  0x10   :  { %p1466_p7 = pnand %p1465_p6, %p1459_p3 }
  0x12   :  { %1469 = shalt.err (!%p1466_p7)  }
  0x13   :  { %s1761_s18 = smov [#allocation5]   ;;  %s1470_s0 = scalar_lea.vmem %s19_s16, 16 }
  0x14   :  { %17 = dma.vmem_to_smem %s15_s13, 16, %s1761_s18, [#allocation3] }
  0x15   :  { %p1471_p8 = scmp.ne.s32.totalorder %s19_s16, %s1470_s0  ;;  %p1475_p9 = scmp.lt.s32.totalorder %s19_s16, %s19_s16 }
  0x16   :  { %p1476_p10 = scmp.lt.s32.totalorder %s1470_s0, %s1470_s0 }
  0x18   :  { %p1477_p11 = por %p1476_p10, %p1475_p9 }
  0x1a   :  { %p1478_p12 = pnand %p1477_p11, %p1471_p8 }
  0x1c   :  { %1481 = shalt.err (!%p1478_p12)  }
  0x1d   :  { %s1762_s1 = smov [#allocation6]  }
  0x1e   :  { %21 = dma.vmem_to_smem %s19_s16, 16, %s1762_s1, [#allocation3] }
  0x1f   :  { %1682 = dma.done.wait [#allocation3], 48 }
  0x20   :  { %1683 = vsyncadd [#allocation3], 4294967248 }
  0x21   :  { %23 = sfence }
  0x22   :  { %24 = vsyncpa [#allocation8], 0 }
  0x23   :  { %26 = vsyncpa [#allocation8 + $0x1], 0 }
  0x24   :  { %27 = vsyncpa [#allocation11], 0 }
  0x25   :  { %29 = vsyncpa [#allocation11 + $0x1], 0 }
  0x26   :  { %30 = vsyncpa [#allocation14], 0 }
  0x27   :  { %31 = vsyncpa [#allocation9], 0 }
  0x28   :  { %33 = vsyncpa [#allocation9 + $0x1], 0  ;;  %s1834_s2 = smov 0   ;;  %s1836_s19 = smov 0  }
  0x29   :  { %s1838_s20 = smov 0   ;;  %s1840_s21 = smov 0  }
  0x2a   :  { %s1842_s22 = smov 0   ;;  %s1844_s23 = smov 0  }
  0x2b   :  { %s1846_s24 = smov 0   ;;  %s1848_s25 = smov 0  }
  0x2c   :  { %s1850_s26 = smov 0   ;;  %s1852_s27 = smov 0  }
  0x2d   :  { %s1854_s28 = smov 0   ;;  %s1856_s29 = smov 0  }
  0x2e   :  { %s1858_s30 = smov 0   ;;  %s1860_s8 = smov 0  }
  0x2f LB: > { %2399 = sst [smem:[#allocation29_spill]] %s1706_s2  ;;  %s1901_s9 = sadd.s32 4294967295, %s1758_s8   ;;  %s1758_s8 = sphi %s1860_s8, %s39_s8   ;;  %s1754_s30 = sphi %s1858_s30, %s2469_s30   ;;  %s1750_s29 = sphi %s1856_s29, %s2459_s29   ;;  %s1746_s28 = sphi %s1854_s28, %s2468_s28   ;;  %s1742_s27 = sphi %s1852_s27, %s2458_s27   ;;  %s1738_s26 = sphi %s1850_s26, %s2467_s26   ;;  %s1734_s25 = sphi %s1848_s25, %s2466_s25   ;;  %s1730_s24 = sphi %s1846_s24, %s2465_s24   ;;  %s1726_s23 = sphi %s1844_s23, %s2464_s23   ;;  %s1722_s22 = sphi %s1842_s22, %s2463_s22   ;;  %s1718_s21 = sphi %s1840_s21, %s2462_s21   ;;  %s1714_s20 = sphi %s1838_s20, %s2461_s20   ;;  %s1710_s19 = sphi %s1836_s19, %s2460_s19   ;;  %s1706_s2 = sphi %s1834_s2, %s2457_s2  }
  0x30   : > { %2400 = sst [smem:[#allocation30_spill]] %s1710_s19  ;;  %p81_p13 = scmp.ne.s32.totalorder %s1734_s25, %s1730_s24 }
  0x31   : > { %2401 = sst [smem:[#allocation31_spill]] %s1742_s27  ;;  %p2372_p0 = scmp.eq.s32.totalorder %s1901_s9, 0 }
  0x32   : > { %2402 = sst [smem:[#allocation32_spill]] %s1746_s28  ;;  %s1064_s10 = sadd.s32 4294967294, %s1758_s8  }
  0x33   : > { %2403 = sst [smem:[#allocation33_spill]] %s1750_s29  ;;  %p109_p1 = scmp.ne.s32.totalorder %s1722_s22, %s1718_s21 }
  0x34   : > { %2404 = sst [smem:[#allocation34_spill]] %s1901_s9  ;;  %p1909_p2 = por %p2372_p0, %p81_p13 }
  0x35   : > { %p176_p3 = scmp.ne.s32.totalorder %s1714_s20, %s1710_s19  ;;  %p1917_p4 = por %p109_p1, %p2372_p0 }
  0x36   : > { %s2405_s11 = scalar_select %p1909_p2, 1, 0 }
  0x37   : > { %s2407_s12 = scalar_select %p1917_p4, 1, 0 }
  0x38   : > { %2406 = sst [smem:[#allocation35_spill]] %s2405_s11  ;;  %p177_p5 = scmp.eq.s32.totalorder %s1901_s9, 11 }
  0x39   : > { %2408 = sst [smem:[#allocation36_spill]] %s2407_s12  ;;  %p182_p6 = scmp.ne.s32.totalorder %s1710_s19, %s1706_s2 }
  0x3a   : > { %p183_p7 = scmp.eq.s32.totalorder %s1064_s10, 11  ;;  %p1924_p8 = por %p177_p5, %p176_p3 }
  0x3b   : > { %p1065_p9 = scmp.ge.s32.totalorder %s1758_s8, 1  ;;  %p190_p11 = scmp.lt.s32.totalorder %s1758_s8, 13 }
  0x3c   : > { %s2409_s13 = scalar_select %p1924_p8, 1, 0 }
  0x3d   : > { %p1929_p10 = por %p183_p7, %p182_p6  ;;  %p1934_p12 = pnand %p1065_p9, %p190_p11 }
  0x3e   : > { %2410 = sst [smem:[#allocation37_spill]] %s2409_s13  ;;  %s1763_s16 = smov [#allocation12]  }
  0x3f   : > { %s2411_s14 = scalar_select %p1929_p10, 1, 0 }
  0x40   : > { %s2413_s15 = scalar_select %p1934_p12, 1, 0 }
  0x41   : > { %2412 = sst [smem:[#allocation38_spill]] %s2411_s14  ;;  %s202_s17 = sshll.u32 %s1763_s16, 4  ;;  %s203_s17 = int_to_ptr.vmem [resolvable:$true] %s202_s17 }
  0x42   : > { %p1269_p13 = pneg %p1934_p12  ;;  %s1764_s0 = smov [#allocation13]  }
  0x43   : > { %s215_s1 = sshll.u32 %s1764_s0, 4  ;;  %s2415_s5 = sld [smem:[#allocation40_spill]]  ;;  %s1946_s1 = int_to_ptr.vmem [resolvable:$true] %s215_s1 }
  0x44   : > { %p1942_p1 = pnand %p1269_p13, %p2372_p0 }
  0x46   : > { %p1484_p5 = pneg %p1942_p1 }
  0x49   : > { %s1482_s10 = scalar_lea.hbm %s2415_s5, 4096 }
  0x4a   : > { %p1483_p3 = scmp.ne.s32.totalorder %s2415_s5, %s1482_s10  ;;  %p1489_p9 = scmp.lt.u32.totalorder %s1482_s10, %s2415_s5 }
  0x4c   : > { %p1485_p6 = pnand %p1484_p5, %p1483_p3 }
  0x4e   : > { %p1486_p7 = pneg %p1485_p6 }
  0x50   : > { %p1491_p11 = pnand %p1489_p9, %p1486_p7 }
  0x52   : > { %1494 = shalt.err (!%p1491_p11)
}
  0x53   : > { %s1495_s0 = scalar_lea.vmem %s203_s17, 4096  ;;  %p1503_p8 = scmp.lt.s32.totalorder %s203_s17, %s203_s17 }
  0x54   : > { %p1496_p13 = scmp.ne.s32.totalorder %s203_s17, %s1495_s0  ;;  %p1504_p4 = scmp.lt.s32.totalorder %s1495_s0, %s1495_s0 }
  0x56   : > { %p1498_p0 = pnand %p1496_p13, %p1484_p5  ;;  %p1505_p2 = por %p1504_p4, %p1503_p8 }
  0x58   : > { %p1499_p10 = pneg %p1498_p0 }
  0x5a   : > { %p1506_p12 = pnand %p1505_p2, %p1499_p10 }
  0x5c   : > { %1509 = shalt.err (!%p1506_p12)
}
  0x5d   : > { %s2379_s14 = smov 64   ;;  %s2380_s21 = smov 4  }
  0x5e   : > { %1272 = dma.hbm_to_vmem [thread:$0]  (!%p1942_p1), %s2415_s5, 4096, %s203_s17, [#allocation11], %s2379_s14, %s2379_s14, %s2380_s21  }
  0x5f   : > { %s2416_s6 = sld [smem:[#allocation41_spill]] }
  0x65   : > { %s1510_s16 = scalar_lea.hbm %s2416_s6, 1024 }
  0x66   : > { %p1511_p0 = scmp.ne.s32.totalorder %s2416_s6, %s1510_s16  ;;  %p1517_p8 = scmp.lt.u32.totalorder %s1510_s16, %s2416_s6 }
  0x68   : > { %p1513_p2 = pnand %p1511_p0, %p1484_p5 }
  0x6a   : > { %p1514_p4 = pneg %p1513_p2 }
  0x6c   : > { %p1519_p10 = pnand %p1517_p8, %p1514_p4 }
  0x6e   : > { %1522 = shalt.err (!%p1519_p10)
}
  0x6f   : > { %s1523_s17 = scalar_lea.vmem %s1946_s1, 1024  ;;  %p1531_p7 = scmp.lt.s32.totalorder %s1946_s1, %s1946_s1 }
  0x70   : > { %p1524_p12 = scmp.ne.s32.totalorder %s1946_s1, %s1523_s17  ;;  %p1532_p9 = scmp.lt.s32.totalorder %s1523_s17, %s1523_s17 }
  0x72   : > { %p1526_p3 = pnand %p1524_p12, %p1484_p5  ;;  %p1533_p11 = por %p1532_p9, %p1531_p7 }
  0x74   : > { %p1527_p6 = pneg %p1526_p3 }
  0x76   : > { %p1534_p13 = pnand %p1533_p11, %p1527_p6 }
  0x78   : > { %1537 = shalt.err (!%p1534_p13)
}
  0x79   : > { %1275 = dma.hbm_to_vmem [thread:$0]  (!%p1942_p1), %s2416_s6, 1024, %s1946_s1, [#allocation14], %s2379_s14, %s2379_s14, %s2380_s21  }
  0x7a   : > { %s48_s13 = sadd.s32 1, %s1750_s29  ;;  %s51_s18 = sadd.s32 1, %s1754_s30 }
  0x7b   : > { %p49_p5 = scmp.ge.s32.totalorder %s48_s13, 3  ;;  %p2392_p0 = scmp.lt.s32.totalorder %s1758_s8, 12 }
  0x7c   : > { %s56_s7 = smul.u32 3, %s1754_s30  ;;  %s55_s2 = sld [smem:[#allocation4 + %s1754_s30]] }
  0x7d   : > { %s2471_s18 = smov (!%p49_p5, %s51_s18), %s1754_s30  ;;  %s2473_s13 = smov (%p49_p5, %s48_s13), 0 }
  0x7e   : > { %2417 = sst [smem:[#allocation39_spill]] %s2473_s13  ;;  %p53_p2 = scmp.ge.s32.totalorder %s2471_s18, 4 }
  0x7f   : > { %s2010_s24 = sadd.s32 %s1750_s29, %s56_s7  ;;  %p75_p1 = scmp.ne.s32.totalorder %s1738_s26, %s1734_s25 }
  0x80   : > { %p76_p4 = scmp.eq.s32.totalorder %s1758_s8, 0  ;;  %s2475_s18 = smov (%p53_p2, %s2471_s18), 0 }
  0x81   : > { %s58_s1 = sld [smem:[#allocation5 + %s2010_s24]]  ;;  %s60_s0 = smul.u32 3, %s2475_s18 }
  0x82   : > { %s161_s10 = sld [smem:[#allocation4 + %s1754_s30]]  ;;  %p2023_p8 = por %p76_p4, %p75_p1 }
  0x83   : > { %s59_s16 = sld [smem:[#allocation4 + %s2475_s18]]  ;;  %s61_s28 = sadd.s32 %s60_s0, %s2473_s13 }
  0x84   : > { %s162_s27 = sld [smem:[#allocation4 + %s2475_s18]]  ;;  %s2391_s7 = sand.u32 1, %s1738_s26  }
  0x85   : > { %s62_s14 = sld [smem:[#allocation5 + %s61_s28]]  ;;  %s166_s21 = sadd.s32 1, %s1714_s20 }
  0x86   : > { %p2035_p10 = pnand %p2392_p0, %p2023_p8  ;;  %s68_s6 = sadd.s32 1, %s1738_s26 }
  0x87   : > { %s1069_s29 = sshll.u32 %s2391_s7, 6  ;;  %s2481_s24 = smov (!%p2023_p8, %s2010_s24), 0 }
  0x88   : > { %s1251_s0 = scalar_select %p2023_p8, [#allocation4], [#allocation16] }
  0x89   : > { %s63_s13 = ssub.s32 %s55_s2, %s59_s16  ;;  %s2485_s24 = smov (!%p2392_p0, %s2481_s24), 0 }
  0x8a   : > { %s163_s28 = ssub.s32 %s161_s10, %s162_s27  ;;  %s2477_s0 = smov (!%p2392_p0, %s1251_s0), [#allocation20] }
  0x8b   : > { %p164_p12 = scmp.eq.s32.totalorder %s163_s28, 0  ;;  %s64_s19 = ssub.s32 %s58_s1, %s62_s14 }
  0x8c   : > { %s65_s12 = sor.u32 %s64_s19, %s63_s13  ;;  %s91_s19 = sld [smem:[#allocation4 + %s1754_s30]] }
  0x8d   : > { %p66_p3 = scmp.eq.s32.totalorder %s65_s12, 0  ;;  %p103_p6 = scmp.ne.s32.totalorder %s1726_s23, %s1722_s22 }
  0x8e   : > { %s2045_s9 = scalar_select %p164_p12, %s1714_s20, %s166_s21  }
  0x8f   : > { %s2048_s11 = scalar_select %p66_p3, %s1738_s26, %s68_s6  }
  0x90   : > { %s1252_s7 = scalar_select %p2023_p8, %s1754_s30, 0 }
  0x91   : > { %s1253_s2 = scalar_select %p2023_p8, [#allocation5], [#allocation17] }
  0x92   : > { %s2479_s7 = smov (!%p2392_p0, %s1252_s7), 0  ;;  %s233_s6 = scalar_lea.vmem [#allocation7], %s1069_s29 }
  0x93   : > { %s234_s14 = sld [smem:[%s2477_s0 + %s2479_s7]]  ;;  %s2483_s2 = smov (!%p2392_p0, %s1253_s2), [#allocation21] }
  0x94   : > { %s246_s12 = sshll.u32 %s233_s6, 4  ;;  %s92_s21 = sld [smem:[#allocation4 + %s2475_s18]]  ;;  %s2070_s12 = int_to_ptr.vmem [resolvable:$true] %s246_s12 }
  0x95   : > { %s237_s13 = sld [smem:[%s2483_s2 + %s2485_s24]]  ;;  %s96_s10 = sadd.s32 1, %s1726_s23 }
  0x96   : > { %s258_s16 = sand.u32 1, %s1726_s23   ;;  %p2076_p7 = por %p103_p6, %p76_p4 }
  0x97   : > { %s2084_s0 = sshll.u32 %s258_s16, 7  ;;  %s2423_s6 = sand.u32 1, %s1738_s26  }
  0x98   : > { %s2420_s27 = scalar_select %p2076_p7, 1, 0 }
  0x99   : > { %s1116_s1 = sshll.u32 %s234_s14, 6  ;;  %p2095_p11 = pnand %p2392_p0, %p2076_p7 }
  0x9a   : > { %s93_s17 = ssub.s32 %s91_s19, %s92_s21  ;;  %s2101_s21 = scalar_lea.sflag [#allocation8], %s2423_s6 }
  0x9b   : > { %s243_s29 = sadd.s32 %s1116_s1, %s237_s13  ;;  %p2080_p9 = scmp.eq.s32.totalorder %s93_s17, 0 }
  0x9c   : > { %s1072_s24 = sshll.u32 %s243_s29, 6  ;;  %p1540_p5 = pneg %p2035_p10 }
  0x9d   : > { %s2089_s14 = scalar_lea.hbm %s2362_s3, %s1072_s24  ;;  %s1543_s17 = scalar_lea.hbm %s2362_s3, 16384 }
  0x9e   : > { %s2422_s19 = scalar_select %p2095_p11, 1, 0 }
  0x9f   : > { %s1538_s13 = scalar_lea.hbm %s2089_s14, 1024  ;;  %p1544_p4 = scmp.lt.u32.totalorder %s2089_s14, %s2362_s3 }
  0xa0   : > { %p1539_p13 = scmp.ne.s32.totalorder %s2089_s14, %s1538_s13  ;;  %p1545_p8 = scmp.lt.u32.totalorder %s1543_s17, %s1538_s13 }
  0xa1   : > { %p1547_p3 = scmp.lt.u32.totalorder %s1538_s13, %s2089_s14 }
  0xa2   : > { %p1541_p2 = pnand %p1540_p5, %p1539_p13  ;;  %p1546_p12 = por %p1545_p8, %p1544_p4 }
  0xa4   : > { %p1542_p1 = pneg %p1541_p2  ;;  %p1548_p6 = por %p1547_p3, %p1546_p12 }
  0xa6   : > { %p1549_p0 = pnand %p1548_p6, %p1542_p1 }
  0xa8   : > { %1552 = shalt.err (!%p1549_p0)
}
  0xa9   : > { %s1553_s28 = scalar_lea.vmem %s2070_s12, 1024  ;;  %s1767_s2 = smov [#allocation7]  }
  0xaa   : > { %p1554_p13 = scmp.ne.s32.totalorder %s2070_s12, %s1553_s28  ;;  %s1558_s6 = sshll.u32 %s1767_s2, 4  ;;  %s1559_s6 = int_to_ptr.vmem [resolvable:$false] %s1558_s6 }
  0xab   : > { %s1560_s1 = scalar_lea.vmem %s1559_s6, 2048  ;;  %p1561_p7 = scmp.lt.s32.totalorder %s2070_s12, %s1559_s6 }
  0xac   : > { %p1556_p2 = pnand %p1554_p13, %p1540_p5  ;;  %p1562_p4 = scmp.lt.s32.totalorder %s1560_s1, %s1553_s28 }
  0xae   : > { %p1557_p11 = pneg %p1556_p2  ;;  %p1563_p8 = por %p1562_p4, %p1561_p7 }
  0xb0   : > { %p1564_p12 = pnand %p1563_p8, %p1557_p11 }
  0xb2   : > { %1567 = shalt.err (!%p1564_p12)
}
  0xb3   : > { %s1768_s13 = smov 256   ;;  %s2424_s16 = smov 4  }
  0xb4   : > { %s2425_s17 = smov 64   ;;  %p2426_p0 = scmp.ne.s32.totalorder %s2420_s27, 0 }
  0xb5   : > { %1283 = dma.hbm_to_vmem [thread:$0]  (!%p2035_p10), %s2089_s14, 1024, %s2070_s12, %s2101_s21, %s1768_s13, %s2425_s17, %s2424_s16  }
  0xb6   : > { %s2136_s5 = scalar_select %p2080_p9, %s1726_s23, %s96_s10  }
  0xb7   : > { %s1256_s29 = scalar_select %p2426_p0, [#allocation4], [#allocation18] }
  0xb8   : > { %s1257_s24 = scalar_select %p2426_p0, %s1754_s30, 0 }
  0xb9   : > { %p2427_p7 = scmp.lt.s32.totalorder %s1758_s8, 12  ;;  %s256_s2 = sand.u32 1, %s1758_s8  }
  0xba   : > { %s260_s6 = scalar_lea.vmem [#allocation10], %s2084_s0  ;;  %s2156_s27 = scalar_lea.sflag [#allocation11], %s256_s2 }
  0xbb   : > { %s2487_s29 = smov (!%p2427_p7, %s1256_s29), [#allocation22]  ;;  %p2428_p11 = pmov %p2427_p7 }
  0xbc   : > { %s268_s1 = sshll.u32 %s260_s6, 4  ;;  %p2429_p9 = scmp.ne.s32.totalorder %s2422_s19, 0  ;;  %s2149_s1 = int_to_ptr.vmem [resolvable:$true] %s268_s1 }
  0xbd   : > { %s2489_s24 = smov (!%p2428_p11, %s1257_s24), 0  ;;  %s1573_s16 = scalar_lea.hbm %s2363_s4, 8192 }
  0xbe   : > { %s261_s28 = sld [smem:[%s2487_s29 + %s2489_s24]]  ;;  %p1570_p5 = pneg %p2429_p9 }
  0xc4   : > { %s1117_s12 = sshll.u32 %s261_s28, 11 }
  0xc5   : > { %s2154_s10 = scalar_lea.hbm %s2363_s4, %s1117_s12 }
  0xc6   : > { %s1568_s21 = scalar_lea.hbm %s2154_s10, 2048  ;;  %p1574_p6 = scmp.lt.u32.totalorder %s2154_s10, %s2363_s4 }
  0xc7   : > { %p1569_p10 = scmp.ne.s32.totalorder %s2154_s10, %s1568_s21  ;;  %p1575_p13 = scmp.lt.u32.totalorder %s1573_s16, %s1568_s21 }
  0xc8   : > { %p1577_p4 = scmp.lt.u32.totalorder %s1568_s21, %s2154_s10 }
  0xc9   : > { %p1571_p1 = pnand %p1570_p5, %p1569_p10  ;;  %p1576_p2 = por %p1575_p13, %p1574_p6 }
  0xcb   : > { %p1572_p3 = pneg %p1571_p1  ;;  %p1578_p8 = por %p1577_p4, %p1576_p2 }
  0xcd   : > { %p1579_p12 = pnand %p1578_p8, %p1572_p3 }
  0xcf   : > { %1582 = shalt.err (!%p1579_p12)
}
  0xd0   : > { %s1583_s24 = scalar_lea.vmem %s2149_s1, 2048  ;;  %s1769_s28 = smov [#allocation10]  }
  0xd1   : > { %p1584_p0 = scmp.ne.s32.totalorder %s2149_s1, %s1583_s24  ;;  %s1588_s2 = sshll.u32 %s1769_s28, 4  ;;  %s1589_s2 = int_to_ptr.vmem [resolvable:$false] %s1588_s2 }
  0xd2   : > { %s1590_s6 = scalar_lea.vmem %s1589_s2, 4096  ;;  %p1591_p10 = scmp.lt.s32.totalorder %s2149_s1, %s1589_s2 }
  0xd3   : > { %p1586_p7 = pnand %p1584_p0, %p1570_p5  ;;  %p1592_p1 = scmp.lt.s32.totalorder %s1590_s6, %s1583_s24 }
  0xd5   : > { %p1587_p11 = pneg %p1586_p7  ;;  %p1593_p6 = por %p1592_p1, %p1591_p10 }
  0xd7   : > { %p1594_p13 = pnand %p1593_p6, %p1587_p11 }
  0xd9   : > { %1597 = shalt.err (!%p1594_p13)
}
  0xda   : > { %s1770_s12 = smov 128   ;;  %s1771_s7 = smov 8  }
  0xdb   : > { %1288 = dma.hbm_to_vmem [thread:$0]  (!%p2429_p9), %s2154_s10, 2048, %s2149_s1, %s2156_s27, %s1770_s12, %s1770_s12, %s1771_s7  }
  0xdc   : > { %p2430_p5 = scmp.ne.s32.totalorder %s2413_s15, 0 }
  0xdd   : > { %s2431_s14 = sld [smem:[#allocation35_spill]] (!%p2430_p5)  ;;  %s282_s21 = sand.u32 (!%p2430_p5), 1, %s1734_s25  }
  0xde   : > { %280 = sbr.rel (%p2430_p5) target bundleno = 852 (0x354), region = 36  ;;  %s1077_s0 = sshll.u32 (!%p2430_p5), %s282_s21, 6 }
  0xdf   : > { %s283_s13 = scalar_lea.sflag (!%p2430_p5), [#allocation8], %s282_s21  ;;  %s2187_s16 = scalar_lea.vmem (!%p2430_p5), [#allocation7], %s1077_s0 }
  0xe3   : > { %p2432_p3 = scmp.ne.s32.totalorder (!%p2430_p5), %s2431_s14, 0 }
  0xe5   : > { %1685 = dma.done.wait (%p2432_p3), %s283_s13, 1024  }
  0xe6   : > { %1687 = vsyncadd (%p2432_p3), %s283_s13, 4294966272  ;;  %s2433_s17 = sld [smem:[#allocation34_spill]]  ;;  %s2434_s29 = sld [smem:[#allocation36_spill]] }
  0xe7   : > { %s293_s1 = sand.u32 1, %s1722_s22  }
  0xe8   : > { %s1078_s10 = sshll.u32 %s293_s1, 7 }
  0xe9   : > { %s2195_s27 = scalar_lea.vmem [#allocation10], %s1078_s10 }
  0xec   : > { %s291_s19 = sand.u32 1, %s2433_s17   ;;  %p2435_p9 = scmp.ne.s32.totalorder %s2434_s29, 0 }
  0xed   : > { %s292_s15 = scalar_lea.sflag [#allocation11], %s291_s19 }
  0xee   : > { %1689 = dma.done.wait (%p2435_p9), %s292_s15, 2048  }
  0xef   : > { %1691 = vsyncadd (%p2435_p9), %s292_s15, 4294965248  ;;  %p2436_p2 = scmp.eq.s32.totalorder %s2433_s17, 0 }
  0xf1   : > { %1693 = dma.done.wait (%p2436_p2), [#allocation11], 4096   ;;  %p2437_p4 = pmov %p2436_p2 }
  0xf2   : > { %p2438_p8 = pmov %p2436_p2 }
  0xf3   : > { %1695 = vsyncadd (%p2437_p4), [#allocation11], 4294963200 }
  0xf4   : > { %1697 = dma.done.wait (%p2438_p8), [#allocation14], 1024   ;;  %p2439_p12 = pmov %p2436_p2 }
  0xf5   : > { %s2440_s24 = sld [smem:[#allocation30_spill]]  ;;  %s2441_s12 = sld [smem:[#allocation31_spill]] }
  0xf6   : > { %1699 = vsyncadd (%p2439_p12), [#allocation14], 4294966272 }
  0xfb   : > { %s330_s28 = sand.u32 1, %s2440_s24   ;;  %p1082_p0 = scmp.ne.s32.totalorder %s2441_s12, 0 }
  0xfc   : > { %s1081_s2 = sshll.u32 %s330_s28, 7  ;;  %v1772_v0 = vmov (!%p1082_p0), 0.0  }
  0xfd   : > { %s2212_s6 = scalar_lea.vmem [#allocation15], %s1081_s2  ;;  %346 = sbr.rel (%p1082_p0) target bundleno = 261 (0x105), region = 56  ;;  %347 = vst [vmem:[#allocation2] sm:$0xff] (!%p1082_p0), %v1772_v0  ;;  %348 = vst [vmem:[#allocation2 + $0x8] sm:$0xff] (!%p1082_p0), %v1772_v0 }
  0xfe   : > { %349 = vst [vmem:[#allocation2 + $0x10] sm:$0xff] (!%p1082_p0), %v1772_v0  ;;  %350 = vst [vmem:[#allocation2 + $0x18] sm:$0xff] (!%p1082_p0), %v1772_v0 }
  0xff   : > { %351 = vst [vmem:[#allocation2 + $0x20] sm:$0xff] (!%p1082_p0), %v1772_v0  ;;  %352 = vst [vmem:[#allocation2 + $0x28] sm:$0xff] (!%p1082_p0), %v1772_v0 }
 0x100   : > { %353 = vst [vmem:[#allocation2 + $0x30] sm:$0xff] (!%p1082_p0), %v1772_v0  ;;  %354 = vst [vmem:[#allocation2 + $0x38] sm:$0xff] (!%p1082_p0), %v1772_v0 }
 0x101   : > { %355 = vst [vmem:[#allocation2 + $0x40] sm:$0xff] (!%p1082_p0), %v1772_v0  ;;  %356 = vst [vmem:[#allocation2 + $0x48] sm:$0xff] (!%p1082_p0), %v1772_v0 }
 0x102   : > { %357 = vst [vmem:[#allocation2 + $0x50] sm:$0xff] (!%p1082_p0), %v1772_v0  ;;  %358 = vst [vmem:[#allocation2 + $0x58] sm:$0xff] (!%p1082_p0), %v1772_v0 }
 0x103   : > { %359 = vst [vmem:[#allocation2 + $0x60] sm:$0xff] (!%p1082_p0), %v1772_v0  ;;  %360 = vst [vmem:[#allocation2 + $0x68] sm:$0xff] (!%p1082_p0), %v1772_v0 }
 0x104   : > { %361 = vst [vmem:[#allocation2 + $0x70] sm:$0xff] %v1772_v0  ;;  %362 = vst [vmem:[#allocation2 + $0x78] sm:$0xff] %v1772_v0 }
 0x105 PF: > { %s2442_s7 = sld [smem:[#allocation32_spill]]  ;;  %s2443_s21 = sld [smem:[#allocation31_spill]] }
 0x10b   : > { %s363_s14 = sld [smem:[#allocation6 + %s2442_s7]] }
 0x111   : > { %p1083_p7 = scmp.ge.s32.totalorder %s2443_s21, %s363_s14 }
 0x112   : > { %s2444_s0 = sld [smem:[#allocation32_spill]] (!%p1083_p7)  ;;  %s2445_s13 = sld [smem:[#allocation31_spill]] (!%p1083_p7)  ;;  %v1432_v1 = vld [vmem:[%s2187_s16] sm:$0xff] (!%p1083_p7)   ;;  %v1434_v11 = vld [vmem:[%s2187_s16 + $0x8] sm:$0xff] (!%p1083_p7)   ;;  %v1436_v13 = vld [vmem:[%s2187_s16 + $0x10] sm:$0xff] (!%p1083_p7)  }
 0x113   : > { %367 = sbr.rel (%p1083_p7) target bundleno = 552 (0x228), region = 60  ;;  %v1433_v2 = vld [vmem:[%s2187_s16 + $0x20] sm:$0xff] (!%p1083_p7)   ;;  %1167 = vmatprep.mubr.bf16.mxu0 (!%p1083_p7), %v1432_v1  ;;  %v1435_v12 = vld [vmem:[%s2187_s16 + $0x28] sm:$0xff] (!%p1083_p7)   ;;  %v1437_v14 = vld [vmem:[%s2187_s16 + $0x30] sm:$0xff] (!%p1083_p7)  }
 0x114   : > { %1175 = vmatprep.mubr.bf16.mxu1 (!%p1083_p7), %v1433_v2  ;;  %v1438_v15 = vld [vmem:[%s2187_s16 + $0x18] sm:$0xff] (!%p1083_p7)   ;;  %v394_v17 = vld [vmem:[#allocation2 + $0x10] sm:$0xff] (!%p1083_p7)  ;;  %v392_v19 = vld [vmem:[#allocation2] sm:$0xff] (!%p1083_p7) }
 0x115   : > { %v1439_v16 = vld [vmem:[%s2187_s16 + $0x38] sm:$0xff] (!%p1083_p7)   ;;  %v402_v18 = vld [vmem:[#allocation2 + $0x50] sm:$0xff] (!%p1083_p7)  ;;  %v400_v20 = vld [vmem:[#allocation2 + $0x40] sm:$0xff] (!%p1083_p7) }
 0x116   : > { %v395_v23 = vld [vmem:[#allocation2 + $0x18] sm:$0xff] (!%p1083_p7)  ;;  %v393_v29 = vld [vmem:[#allocation2 + $0x8] sm:$0xff] (!%p1083_p7)  ;;  %v398_v41 = vld [vmem:[#allocation2 + $0x30] sm:$0xff] (!%p1083_p7) }
 0x117   : > { %v403_v24 = vld [vmem:[#allocation2 + $0x58] sm:$0xff] (!%p1083_p7)  ;;  %v401_v30 = vld [vmem:[#allocation2 + $0x48] sm:$0xff] (!%p1083_p7)  ;;  %v406_v42 = vld [vmem:[#allocation2 + $0x70] sm:$0xff] (!%p1083_p7) }
 0x118   : > { %s368_s17 = smul.u32 (!%p1083_p7), 3, %s2444_s0  ;;  %v396_v43 = vld [vmem:[#allocation2 + $0x20] sm:$0xff] (!%p1083_p7)  ;;  %v399_v47 = vld [vmem:[#allocation2 + $0x38] sm:$0xff] (!%p1083_p7)  ;;  %v397_v53 = vld [vmem:[#allocation2 + $0x28] sm:$0xff] (!%p1083_p7) }
 0x119   : > { %v404_v44 = vld [vmem:[#allocation2 + $0x60] sm:$0xff] (!%p1083_p7)  ;;  %v407_v48 = vld [vmem:[#allocation2 + $0x78] sm:$0xff] (!%p1083_p7)  ;;  %v405_v54 = vld [vmem:[#allocation2 + $0x68] sm:$0xff] (!%p1083_p7) }
 0x11a   : > { %s369_s29 = sadd.s32 %s2445_s13, %s368_s17 }
 0x11b   : > { %s370_s19 = sld [smem:[#allocation5 + %s369_s29]] }
 0x121   : > { %s1084_s1 = sshll.u32 %s370_s19, 7 }
 0x122   : > { %s372_s10 = sshra.s32 %s1084_s1, 3 }
 0x123   : > { %s1085_s15 = sshll.u32 %s372_s10, 2 }
 0x124   : > { %s2221_s24 = scalar_lea.vmem [#allocation12], %s1085_s15 }
 0x125   : > { %v1424_v3 = vld [vmem:[%s2221_s24] sm:$0xff]   ;;  %v1425_v4 = vld [vmem:[%s2221_s24 + $0x8] sm:$0xff]   ;;  %v1426_v5 = vld [vmem:[%s2221_s24 + $0x10] sm:$0xff]  }
 0x126   : > { %1151 = vmatprep.subr.bf16.mxu0 %v1424_v3  ;;  %1215 = vmatprep.subr.bf16.mxu1 %v1424_v3  ;;  %v1427_v6 = vld [vmem:[%s2221_s24 + $0x18] sm:$0xff]   ;;  %v1428_v7 = vld [vmem:[%s2221_s24 + $0x20] sm:$0xff]   ;;  %v1429_v8 = vld [vmem:[%s2221_s24 + $0x28] sm:$0xff]  }
 0x127   : > { %1152 = vmatpush3.bf16.msra.mxu0 %v1424_v3  ;;  %1223 = vmatpush3.bf16.msra.mxu1 %v1424_v3  ;;  %v1430_v9 = vld [vmem:[%s2221_s24 + $0x30] sm:$0xff]   ;;  %v1431_v10 = vld [vmem:[%s2221_s24 + $0x38] sm:$0xff]  }
 0x128   : > { %1153 = vmatprep.subr.bf16.mxu0 %v1425_v4  ;;  %1216 = vmatprep.subr.bf16.mxu1 %v1425_v4 }
 0x12b   : > { %1154 = vmatpush3.bf16.msra.mxu0 %v1425_v4  ;;  %1224 = vmatpush3.bf16.msra.mxu1 %v1425_v4 }
 0x12c   : > { %1155 = vmatprep.subr.bf16.mxu0 %v1426_v5  ;;  %1217 = vmatprep.subr.bf16.mxu1 %v1426_v5 }
 0x12f   : > { %1156 = vmatpush3.bf16.msra.mxu0 %v1426_v5  ;;  %1225 = vmatpush3.bf16.msra.mxu1 %v1426_v5 }
 0x130   : > { %1157 = vmatprep.subr.bf16.mxu0 %v1427_v6  ;;  %1218 = vmatprep.subr.bf16.mxu1 %v1427_v6 }
 0x133   : > { %1158 = vmatpush3.bf16.msra.mxu0 %v1427_v6  ;;  %1226 = vmatpush3.bf16.msra.mxu1 %v1427_v6 }
 0x134   : > { %1159 = vmatprep.subr.bf16.mxu0 %v1428_v7  ;;  %1219 = vmatprep.subr.bf16.mxu1 %v1428_v7 }
 0x137   : > { %1160 = vmatpush3.bf16.msra.mxu0 %v1428_v7  ;;  %1227 = vmatpush3.bf16.msra.mxu1 %v1428_v7 }
 0x138   : > { %1161 = vmatprep.subr.bf16.mxu0 %v1429_v8  ;;  %1220 = vmatprep.subr.bf16.mxu1 %v1429_v8 }
 0x13b   : > { %1162 = vmatpush3.bf16.msra.mxu0 %v1429_v8  ;;  %1228 = vmatpush3.bf16.msra.mxu1 %v1429_v8 }
 0x13c   : > { %1163 = vmatprep.subr.bf16.mxu0 %v1430_v9  ;;  %1221 = vmatprep.subr.bf16.mxu1 %v1430_v9 }
 0x13f   : > { %1164 = vmatpush3.bf16.msra.mxu0 %v1430_v9  ;;  %1229 = vmatpush3.bf16.msra.mxu1 %v1430_v9 }
 0x140   : > { %1165 = vmatprep.subr.bf16.mxu0 %v1431_v10  ;;  %1222 = vmatprep.subr.bf16.mxu1 %v1431_v10 }
 0x143   : > { %1166 = vmatpush3.bf16.msra.mxu0 %v1431_v10  ;;  %1230 = vmatpush3.bf16.msra.mxu1 %v1431_v10 }
 0x146   : > { %1168 = vmatmul.mubr.bf16.vlgmr.msra.gmra.mrb[0].mxu0 %v1434_v11  ;;  %1176 = vmatmul.mubr.bf16.vlgmr.msra.gmra.mrb[0].mxu1 %v1435_v12 }
 0x147   : > { %1171 = vmatprep.mubr.bf16.mxu0 %v1436_v13  ;;  %1179 = vmatprep.mubr.bf16.mxu1 %v1437_v14 }
 0x14e   : > { %1172 = vmatmul.mubr.bf16.gmra.mrb[4].mxu0 %v1438_v15  ;;  %1180 = vmatmul.mubr.bf16.gmra.mrb[4].mxu1 %v1439_v16 }
 0x219   : > { %v1169_v21 = vpop.f32.mrb[0].mxu0  ;;  %v1177_v22 = vpop.f32.mrb[0].mxu1 }
 0x21a   : > { %v619_v25 = vadd.f32 %v1169_v21, %v394_v17  ;;  %v627_v26 = vadd.f32 %v1177_v22, %v402_v18  ;;  %v554_v27 = vpop.f32.mrb[1].mxu0  ;;  %v586_v28 = vpop.f32.mrb[1].mxu1 }
 0x21b   : > { %v617_v31 = vadd.f32 %v554_v27, %v392_v19  ;;  %v625_v32 = vadd.f32 %v586_v28, %v400_v20  ;;  %v1170_v33 = vpop.f32.mrb[2].mxu0  ;;  %v1178_v34 = vpop.f32.mrb[2].mxu1 }
 0x21c   : > { %635 = vst [vmem:[#allocation2 + $0x10] sm:$0xff] %v619_v25  ;;  %643 = vst [vmem:[#allocation2 + $0x50] sm:$0xff] %v627_v26  ;;  %v620_v35 = vadd.f32 %v1170_v33, %v395_v23  ;;  %v628_v36 = vadd.f32 %v1178_v34, %v403_v24  ;;  %v557_v37 = vpop.f32.mrb[3].mxu0  ;;  %v589_v38 = vpop.f32.mrb[3].mxu1 }
 0x21d   : > { %633 = vst [vmem:[#allocation2] sm:$0xff] %v617_v31  ;;  %641 = vst [vmem:[#allocation2 + $0x40] sm:$0xff] %v625_v32  ;;  %v618_v39 = vadd.f32 %v557_v37, %v393_v29  ;;  %v626_v40 = vadd.f32 %v589_v38, %v401_v30 }
 0x21e   : > { %636 = vst [vmem:[#allocation2 + $0x18] sm:$0xff] %v620_v35  ;;  %644 = vst [vmem:[#allocation2 + $0x58] sm:$0xff] %v628_v36 }
 0x21f   : > { %634 = vst [vmem:[#allocation2 + $0x8] sm:$0xff] %v618_v39  ;;  %642 = vst [vmem:[#allocation2 + $0x48] sm:$0xff] %v626_v40 }
 0x221   : > { %v1173_v45 = vpop.f32.mrb[4].mxu0  ;;  %v1181_v46 = vpop.f32.mrb[4].mxu1 }
 0x222   : > { %v623_v49 = vadd.f32 %v1173_v45, %v398_v41  ;;  %v631_v50 = vadd.f32 %v1181_v46, %v406_v42  ;;  %v570_v51 = vpop.f32.mrb[5].mxu0  ;;  %v602_v52 = vpop.f32.mrb[5].mxu1 }
 0x223   : > { %v621_v55 = vadd.f32 %v570_v51, %v396_v43  ;;  %v629_v56 = vadd.f32 %v602_v52, %v404_v44  ;;  %v1174_v57 = vpop.f32.mrb[6].mxu0  ;;  %v1182_v58 = vpop.f32.mrb[6].mxu1 }
 0x224   : > { %639 = vst [vmem:[#allocation2 + $0x30] sm:$0xff] %v623_v49  ;;  %647 = vst [vmem:[#allocation2 + $0x70] sm:$0xff] %v631_v50  ;;  %v624_v59 = vadd.f32 %v1174_v57, %v399_v47  ;;  %v632_v60 = vadd.f32 %v1182_v58, %v407_v48  ;;  %v573_v61 = vpop.f32.mrb[7].mxu0  ;;  %v605_v62 = vpop.f32.mrb[7].mxu1 }
 0x225   : > { %637 = vst [vmem:[#allocation2 + $0x20] sm:$0xff] %v621_v55  ;;  %645 = vst [vmem:[#allocation2 + $0x60] sm:$0xff] %v629_v56  ;;  %v622_v63 = vadd.f32 %v573_v61, %v397_v53  ;;  %v630_v0 = vadd.f32 %v605_v62, %v405_v54 }
 0x226   : > { %640 = vst [vmem:[#allocation2 + $0x38] sm:$0xff] %v624_v59  ;;  %648 = vst [vmem:[#allocation2 + $0x78] sm:$0xff] %v632_v60 }
 0x227   : > { %638 = vst [vmem:[#allocation2 + $0x28] sm:$0xff] %v622_v63  ;;  %646 = vst [vmem:[#allocation2 + $0x68] sm:$0xff] %v630_v0 }
 0x228 PF: > { %s2446_s16 = sld [smem:[#allocation31_spill]] }
 0x22e   : > { %p1102_p11 = scmp.ne.s32.totalorder %s2446_s16, 2 }
 0x22f   : > { %v1440_v1 = vld [vmem:[#allocation13] sm:$0xff] (!%p1102_p11)   ;;  %v1441_v2 = vld [vmem:[#allocation13 + $0x8] sm:$0xff] (!%p1102_p11)   ;;  %v1442_v3 = vld [vmem:[#allocation13 + $0x10] sm:$0xff] (!%p1102_p11)  }
 0x230   : > { %652 = sbr.rel (%p1102_p11) target bundleno = 820 (0x334), region = 64  ;;  %1183 = vmatprep.subr.bf16.mxu0 (!%p1102_p11), %v1440_v1  ;;  %1231 = vmatprep.subr.bf16.mxu1 (!%p1102_p11), %v1440_v1  ;;  %v1443_v4 = vld [vmem:[#allocation13 + $0x18] sm:$0xff] (!%p1102_p11)   ;;  %v653_v5 = vld [vmem:[%s2195_s27] sm:$0xff] (!%p1102_p11)  ;;  %v654_v6 = vld [vmem:[%s2195_s27 + $0x8] sm:$0xff] (!%p1102_p11) }
 0x231   : > { %1184 = vmatpush3.bf16.msra.mxu0 (!%p1102_p11), %v1440_v1  ;;  %1239 = vmatpush3.bf16.msra.mxu1 (!%p1102_p11), %v1440_v1  ;;  %v669_v7 = vld [vmem:[#allocation2] sm:$0xff] (!%p1102_p11)  ;;  %v670_v8 = vld [vmem:[#allocation2 + $0x8] sm:$0xff] (!%p1102_p11)  ;;  %v1446_v21 = vld [vmem:[#allocation13 + $0x30] sm:$0xff] (!%p1102_p11)  }
 0x232   : > { %1185 = vmatprep.subr.bf16.mxu0 (!%p1102_p11), %v1441_v2  ;;  %1232 = vmatprep.subr.bf16.mxu1 (!%p1102_p11), %v1441_v2  ;;  %v685_v9 = vmul.f32 (!%p1102_p11), %v669_v7, %v653_v5  ;;  %v661_v10 = vld [vmem:[%s2195_s27 + $0x40] sm:$0xff] (!%p1102_p11)  ;;  %v662_v11 = vld [vmem:[%s2195_s27 + $0x48] sm:$0xff] (!%p1102_p11)  ;;  %v686_v12 = vmul.f32 (!%p1102_p11), %v670_v8, %v654_v6  ;;  %v655_v22 = vld [vmem:[%s2195_s27 + $0x10] sm:$0xff] (!%p1102_p11) }
 0x233   : > { %v677_v13 = vld [vmem:[#allocation2 + $0x40] sm:$0xff] (!%p1102_p11)  ;;  %v678_v14 = vld [vmem:[#allocation2 + $0x48] sm:$0xff] (!%p1102_p11)  ;;  %v671_v23 = vld [vmem:[#allocation2 + $0x10] sm:$0xff] (!%p1102_p11) }
 0x234   : > { %v693_v15 = vmul.f32 (!%p1102_p11), %v677_v13, %v661_v10  ;;  %v694_v16 = vmul.f32 (!%p1102_p11), %v678_v14, %v662_v11  ;;  %v1444_v17 = vld [vmem:[#allocation13 + $0x20] sm:$0xff] (!%p1102_p11)   ;;  %v701_v18 = vpack.c.bf16 (!%p1102_p11), %v686_v12, %v685_v9  ;;  %v1445_v20 = vld [vmem:[#allocation13 + $0x28] sm:$0xff] (!%p1102_p11)   ;;  %v656_v24 = vld [vmem:[%s2195_s27 + $0x18] sm:$0xff] (!%p1102_p11)  ;;  %v687_v39 = vmul.f32 (!%p1102_p11), %v671_v23, %v655_v22 }
 0x235   : > { %1186 = vmatpush3.bf16.msra.mxu0 (!%p1102_p11), %v1441_v2  ;;  %1240 = vmatpush3.bf16.msra.mxu1 (!%p1102_p11), %v1441_v2  ;;  %v672_v25 = vld [vmem:[#allocation2 + $0x18] sm:$0xff] (!%p1102_p11)  ;;  %v663_v26 = vld [vmem:[%s2195_s27 + $0x50] sm:$0xff] (!%p1102_p11)  ;;  %v657_v31 = vld [vmem:[%s2195_s27 + $0x20] sm:$0xff] (!%p1102_p11) }
 0x236   : > { %1187 = vmatprep.subr.bf16.mxu0 (!%p1102_p11), %v1442_v3  ;;  %1233 = vmatprep.subr.bf16.mxu1 (!%p1102_p11), %v1442_v3  ;;  %v705_v19 = vpack.c.bf16 (!%p1102_p11), %v694_v16, %v693_v15  ;;  %v664_v27 = vld [vmem:[%s2195_s27 + $0x58] sm:$0xff] (!%p1102_p11)  ;;  %v679_v28 = vld [vmem:[#allocation2 + $0x50] sm:$0xff] (!%p1102_p11)  ;;  %v658_v32 = vld [vmem:[%s2195_s27 + $0x28] sm:$0xff] (!%p1102_p11)  ;;  %v688_v40 = vmul.f32 (!%p1102_p11), %v672_v25, %v656_v24 }
 0x237   : > { %1199 = vmatprep.mubr.bf16.mxu0 %v701_v18  ;;  %v1447_v29 = vld [vmem:[#allocation13 + $0x38] sm:$0xff]   ;;  %v673_v33 = vld [vmem:[#allocation2 + $0x20] sm:$0xff]  ;;  %v674_v34 = vld [vmem:[#allocation2 + $0x28] sm:$0xff]  ;;  %v695_v41 = vmul.f32 %v679_v28, %v663_v26 }
 0x238   : > { %1207 = vmatprep.mubr.bf16.mxu1 %v705_v19  ;;  %v680_v30 = vld [vmem:[#allocation2 + $0x58] sm:$0xff]  ;;  %v665_v35 = vld [vmem:[%s2195_s27 + $0x60] sm:$0xff]  ;;  %v666_v36 = vld [vmem:[%s2195_s27 + $0x68] sm:$0xff]  ;;  %v689_v43 = vmul.f32 %v673_v33, %v657_v31  ;;  %v690_v44 = vmul.f32 %v674_v34, %v658_v32  ;;  %v702_v49 = vpack.c.bf16 %v688_v40, %v687_v39 }
 0x239   : > { %1188 = vmatpush3.bf16.msra.mxu0 %v1442_v3  ;;  %1241 = vmatpush3.bf16.msra.mxu1 %v1442_v3  ;;  %v681_v37 = vld [vmem:[#allocation2 + $0x60] sm:$0xff]  ;;  %v682_v38 = vld [vmem:[#allocation2 + $0x68] sm:$0xff]  ;;  %v696_v42 = vmul.f32 %v680_v30, %v664_v27  ;;  %v659_v47 = vld [vmem:[%s2195_s27 + $0x30] sm:$0xff] }
 0x23a   : > { %1189 = vmatprep.subr.bf16.mxu0 %v1443_v4  ;;  %1234 = vmatprep.subr.bf16.mxu1 %v1443_v4  ;;  %v697_v45 = vmul.f32 %v681_v37, %v665_v35  ;;  %v698_v46 = vmul.f32 %v682_v38, %v666_v36  ;;  %v660_v48 = vld [vmem:[%s2195_s27 + $0x38] sm:$0xff]  ;;  %v675_v51 = vld [vmem:[#allocation2 + $0x30] sm:$0xff]  ;;  %v703_v54 = vpack.c.bf16 %v690_v44, %v689_v43 }
 0x23b   : > { %v706_v50 = vpack.c.bf16 %v696_v42, %v695_v41  ;;  %v676_v52 = vld [vmem:[#allocation2 + $0x38] sm:$0xff]  ;;  %v667_v53 = vld [vmem:[%s2195_s27 + $0x70] sm:$0xff]  ;;  %v691_v59 = vmul.f32 %v675_v51, %v659_v47 }
 0x23c   : > { %v707_v55 = vpack.c.bf16 %v698_v46, %v697_v45  ;;  %v668_v56 = vld [vmem:[%s2195_s27 + $0x78] sm:$0xff]  ;;  %v683_v57 = vld [vmem:[#allocation2 + $0x70] sm:$0xff]  ;;  %v692_v60 = vmul.f32 %v676_v52, %v660_v48 }
 0x23d   : > { %1190 = vmatpush3.bf16.msra.mxu0 %v1443_v4  ;;  %1242 = vmatpush3.bf16.msra.mxu1 %v1443_v4  ;;  %v684_v58 = vld [vmem:[#allocation2 + $0x78] sm:$0xff]  ;;  %v699_v61 = vmul.f32 %v683_v57, %v667_v53 }
 0x23e   : > { %1191 = vmatprep.subr.bf16.mxu0 %v1444_v17  ;;  %1235 = vmatprep.subr.bf16.mxu1 %v1444_v17  ;;  %v700_v62 = vmul.f32 %v684_v58, %v668_v56  ;;  %v704_v63 = vpack.c.bf16 %v692_v60, %v691_v59 }
 0x240   : > { %v708_v0 = vpack.c.bf16 %v700_v62, %v699_v61 }
 0x241   : > { %1192 = vmatpush3.bf16.msra.mxu0 %v1444_v17  ;;  %1243 = vmatpush3.bf16.msra.mxu1 %v1444_v17 }
 0x242   : > { %1193 = vmatprep.subr.bf16.mxu0 %v1445_v20  ;;  %1236 = vmatprep.subr.bf16.mxu1 %v1445_v20 }
 0x245   : > { %1194 = vmatpush3.bf16.msra.mxu0 %v1445_v20  ;;  %1244 = vmatpush3.bf16.msra.mxu1 %v1445_v20 }
 0x246   : > { %1195 = vmatprep.subr.bf16.mxu0 %v1446_v21  ;;  %1237 = vmatprep.subr.bf16.mxu1 %v1446_v21 }
 0x249   : > { %1196 = vmatpush3.bf16.msra.mxu0 %v1446_v21  ;;  %1245 = vmatpush3.bf16.msra.mxu1 %v1446_v21 }
 0x24a   : > { %1197 = vmatprep.subr.bf16.mxu0 %v1447_v29  ;;  %1238 = vmatprep.subr.bf16.mxu1 %v1447_v29 }
 0x24d   : > { %1198 = vmatpush3.bf16.msra.mxu0 %v1447_v29  ;;  %1246 = vmatpush3.bf16.msra.mxu1 %v1447_v29 }
 0x250   : > { %1200 = vmatmul.mubr.bf16.vlgmr.msra.gmra.mrb[0].mxu0 %v702_v49  ;;  %1208 = vmatmul.mubr.bf16.vlgmr.msra.gmra.mrb[0].mxu1 %v706_v50 }
 0x251   : > { %1203 = vmatprep.mubr.bf16.mxu0 %v703_v54  ;;  %1211 = vmatprep.mubr.bf16.mxu1 %v707_v55 }
 0x258   : > { %1204 = vmatmul.mubr.bf16.gmra.mrb[4].mxu0 %v704_v63  ;;  %1212 = vmatmul.mubr.bf16.gmra.mrb[4].mxu1 %v708_v0 }
 0x323   : > { %v1201_v1 = vpop.f32.mrb[0].mxu0  ;;  %v1209_v2 = vpop.f32.mrb[0].mxu1 }
 0x324   : > { %v872_v3 = vmul.f32 0.01, %v1201_v1  ;;  %v880_v4 = vmul.f32 0.01, %v1209_v2  ;;  %v807_v5 = vpop.f32.mrb[1].mxu0  ;;  %v839_v6 = vpop.f32.mrb[1].mxu1 }
 0x325   : > { %v870_v7 = vmul.f32 0.01, %v807_v5  ;;  %v878_v8 = vmul.f32 0.01, %v839_v6  ;;  %v1202_v9 = vpop.f32.mrb[2].mxu0  ;;  %v1210_v10 = vpop.f32.mrb[2].mxu1 }
 0x326   : > { %v888_v11 = vmax.f32 %v1201_v1, %v872_v3  ;;  %v896_v12 = vmax.f32 %v1209_v2, %v880_v4  ;;  %v873_v13 = vmul.f32 0.01, %v1202_v9  ;;  %v881_v14 = vmul.f32 0.01, %v1210_v10  ;;  %v810_v15 = vpop.f32.mrb[3].mxu0  ;;  %v842_v16 = vpop.f32.mrb[3].mxu1 }
 0x327   : > { %v886_v17 = vmax.f32 %v807_v5, %v870_v7  ;;  %v894_v18 = vmax.f32 %v839_v6, %v878_v8  ;;  %v871_v19 = vmul.f32 0.01, %v810_v15  ;;  %v879_v20 = vmul.f32 0.01, %v842_v16 }
 0x328   : > { %904 = vst [vmem:[%s2212_s6 + $0x10] sm:$0xff] %v888_v11  ;;  %912 = vst [vmem:[%s2212_s6 + $0x50] sm:$0xff] %v896_v12  ;;  %v889_v21 = vmax.f32 %v1202_v9, %v873_v13  ;;  %v897_v22 = vmax.f32 %v1210_v10, %v881_v14 }
 0x329   : > { %902 = vst [vmem:[%s2212_s6] sm:$0xff] %v886_v17  ;;  %910 = vst [vmem:[%s2212_s6 + $0x40] sm:$0xff] %v894_v18  ;;  %v887_v23 = vmax.f32 %v810_v15, %v871_v19  ;;  %v895_v24 = vmax.f32 %v842_v16, %v879_v20 }
 0x32a   : > { %905 = vst [vmem:[%s2212_s6 + $0x18] sm:$0xff] %v889_v21  ;;  %913 = vst [vmem:[%s2212_s6 + $0x58] sm:$0xff] %v897_v22 }
 0x32b   : > { %903 = vst [vmem:[%s2212_s6 + $0x8] sm:$0xff] %v887_v23  ;;  %911 = vst [vmem:[%s2212_s6 + $0x48] sm:$0xff] %v895_v24  ;;  %v1205_v25 = vpop.f32.mrb[4].mxu0  ;;  %v1213_v26 = vpop.f32.mrb[4].mxu1 }
 0x32c   : > { %v876_v27 = vmul.f32 0.01, %v1205_v25  ;;  %v884_v28 = vmul.f32 0.01, %v1213_v26  ;;  %v823_v29 = vpop.f32.mrb[5].mxu0  ;;  %v855_v30 = vpop.f32.mrb[5].mxu1 }
 0x32d   : > { %v874_v31 = vmul.f32 0.01, %v823_v29  ;;  %v882_v32 = vmul.f32 0.01, %v855_v30  ;;  %v1206_v33 = vpop.f32.mrb[6].mxu0  ;;  %v1214_v34 = vpop.f32.mrb[6].mxu1 }
 0x32e   : > { %v892_v35 = vmax.f32 %v1205_v25, %v876_v27  ;;  %v900_v36 = vmax.f32 %v1213_v26, %v884_v28  ;;  %v877_v37 = vmul.f32 0.01, %v1206_v33  ;;  %v885_v38 = vmul.f32 0.01, %v1214_v34  ;;  %v826_v39 = vpop.f32.mrb[7].mxu0  ;;  %v858_v40 = vpop.f32.mrb[7].mxu1 }
 0x32f   : > { %v890_v41 = vmax.f32 %v823_v29, %v874_v31  ;;  %v898_v42 = vmax.f32 %v855_v30, %v882_v32  ;;  %v875_v43 = vmul.f32 0.01, %v826_v39  ;;  %v883_v44 = vmul.f32 0.01, %v858_v40 }
 0x330   : > { %908 = vst [vmem:[%s2212_s6 + $0x30] sm:$0xff] %v892_v35  ;;  %916 = vst [vmem:[%s2212_s6 + $0x70] sm:$0xff] %v900_v36  ;;  %v893_v45 = vmax.f32 %v1206_v33, %v877_v37  ;;  %v901_v46 = vmax.f32 %v1214_v34, %v885_v38 }
 0x331   : > { %906 = vst [vmem:[%s2212_s6 + $0x20] sm:$0xff] %v890_v41  ;;  %914 = vst [vmem:[%s2212_s6 + $0x60] sm:$0xff] %v898_v42  ;;  %v891_v47 = vmax.f32 %v826_v39, %v875_v43  ;;  %v899_v48 = vmax.f32 %v858_v40, %v883_v44 }
 0x332   : > { %909 = vst [vmem:[%s2212_s6 + $0x38] sm:$0xff] %v893_v45  ;;  %917 = vst [vmem:[%s2212_s6 + $0x78] sm:$0xff] %v901_v46 }
 0x333   : > { %907 = vst [vmem:[%s2212_s6 + $0x28] sm:$0xff] %v891_v47  ;;  %915 = vst [vmem:[%s2212_s6 + $0x68] sm:$0xff] %v899_v48 }
 0x334 PF: > { %s2447_s27 = sld [smem:[#allocation37_spill]]  ;;  %s2449_s2 = sld [smem:[#allocation32_spill]] }
 0x335   : > { %s933_s21 = sshll.u32 %s2212_s6, 4  ;;  %s2451_s29 = sld [smem:[#allocation42_spill]]  ;;  %s2276_s21 = int_to_ptr.vmem [resolvable:$true] %s933_s21 }
 0x336   : > { %s2285_s10 = scalar_lea.sflag [#allocation9], %s330_s28  ;;  %s1598_s15 = scalar_lea.vmem %s2276_s21, 2048 }
 0x337   : > { %p1599_p1 = scmp.ne.s32.totalorder %s2276_s21, %s1598_s15  ;;  %s1773_s6 = smov [#allocation15]  }
 0x338   : > { %s1602_s24 = sshll.u32 %s1773_s6, 4  ;;  %s1603_s24 = int_to_ptr.vmem [resolvable:$false] %s1602_s24 }
 0x339   : > { %s1604_s16 = scalar_lea.vmem %s1603_s24, 4096  ;;  %p1605_p5 = scmp.lt.s32.totalorder %s2276_s21, %s1603_s24 }
 0x33a   : > { %p2448_p10 = scmp.ne.s32.totalorder %s2447_s27, 0  ;;  %p1606_p3 = scmp.lt.s32.totalorder %s1604_s16, %s1598_s15 }
 0x33b   : > { %s2452_s1 = smov %s2451_s29 }
 0x33c   : > { %s1265_s7 = scalar_select %p2448_p10, [#allocation4], [#allocation19] }
 0x33d   : > { %s2491_s2 = smov (!%p2448_p10, %s2449_s2), 0  ;;  %p1600_p6 = pnand %p1599_p1, %p2448_p10 }
 0x33e   : > { %s926_s14 = sld [smem:[%s1265_s7 + %s2491_s2]]  ;;  %p1607_p9 = por %p1606_p3, %p1605_p5 }
 0x33f   : > { %p1601_p13 = pneg %p1600_p6 }
 0x341   : > { %p1608_p2 = pnand %p1607_p9, %p1601_p13 }
 0x344   : > { %s1118_s0 = sshll.u32 %s926_s14, 11 }
 0x345   : > { %s2281_s19 = scalar_lea.hbm %s2451_s29, %s1118_s0 }
 0x346   : > { %1611 = shalt.err (!%p1608_p2)
}
 0x347   : > { %s1612_s28 = scalar_lea.hbm %s2281_s19, 2048  ;;  %s1616_s7 = scalar_lea.hbm %s2452_s1, 8192 }
 0x348   : > { %p1613_p4 = scmp.ne.s32.totalorder %s2281_s19, %s1612_s28  ;;  %p1617_p0 = scmp.lt.u32.totalorder %s2281_s19, %s2452_s1 }
 0x349   : > { %p1618_p7 = scmp.lt.u32.totalorder %s1616_s7, %s1612_s28  ;;  %p1620_p1 = scmp.lt.u32.totalorder %s1612_s28, %s2281_s19 }
 0x34a   : > { %p1614_p8 = pnand %p1613_p4, %p2448_p10 }
 0x34b   : > { %p1619_p11 = por %p1618_p7, %p1617_p0 }
 0x34c   : > { %p1615_p12 = pneg %p1614_p8 }
 0x34d   : > { %p1621_p6 = por %p1620_p1, %p1619_p11 }
 0x34f   : > { %p1622_p13 = pnand %p1621_p6, %p1615_p12 }
 0x351   : > { %1625 = shalt.err (!%p1622_p13)
}
 0x352   : > { %s1774_s13 = smov 128   ;;  %s1775_s17 = smov 8  }
 0x353   : > { %1267 = dma.vmem_to_hbm [thread:$0]  (%p2448_p10), %s2276_s21, 2048, %s2281_s19, %s2285_s10, %s1774_s13, %s1774_s13, %s1775_s17  }
 0x354 PF: > { %s2453_s29 = sld [smem:[#allocation29_spill]]  ;;  %s2454_s15 = sld [smem:[#allocation38_spill]] }
 0x355   : > { %p1298_p5 = scmp.ge.s32.totalorder %s1758_s8, 2 }
 0x35a   : > { %s948_s6 = sand.u32 1, %s2453_s29   ;;  %p2455_p3 = scmp.ne.s32.totalorder %s2454_s15, 0 }
 0x35b   : > { %s949_s24 = scalar_lea.sflag [#allocation9], %s948_s6 }
 0x35c   : > { %p1290_p9 = pnand %p1298_p5, %p2455_p3 }
 0x35e   : > { %1701 = dma.done.wait (!%p1290_p9), %s949_s24, 2048  }
 0x35f   : > { %1703 = vsyncadd (!%p1290_p9), %s949_s24, 4294965248  ;;  %s39_s8 = sadd.s32 1, %s1758_s8   ;;  %s2457_s2 = sld [smem:[#allocation30_spill]] }
 0x360   : > { %p2314_p2 = scmp.ge.s32.totalorder %s39_s8, 14   ;;  %s2458_s27 = sld [smem:[#allocation33_spill]] }
 0x361   : > { %s2459_s29 = sld [smem:[#allocation39_spill]]  ;;  %s2460_s19 = smov %s1714_s20 }
 0x362   : > { %s2461_s20 = smov %s2045_s9  ;;  %s2462_s21 = smov %s1722_s22 }
 0x363   : > { %s2463_s22 = smov %s1726_s23  ;;  %s2464_s23 = smov %s2136_s5 }
 0x364   : > { %s2465_s24 = smov %s1734_s25  ;;  %s2466_s25 = smov %s1738_s26 }
 0x365   : > { %s2467_s26 = smov %s2048_s11  ;;  %s2468_s28 = smov %s1754_s30 }
 0x366   : > { %s2469_s30 = smov %s2475_s18  ;;  %38 = sbr.rel (!%p2314_p2) target bundleno = 47 (0x2f), region = 115 }
 0x36d   :  { %954 = vsyncpa [#allocation8], 1 }
 0x36e   :  { %956 = vsyncpa [#allocation8 + $0x1], 1 }
 0x36f   :  { %957 = vsyncpa [#allocation11], 1 }
 0x370   :  { %959 = vsyncpa [#allocation11 + $0x1], 1 }
 0x371   :  { %960 = vsyncpa [#allocation14], 1 }
 0x372   :  { %961 = vsyncpa [#allocation9], 1 }
 0x373   :  { %963 = vsyncpa [#allocation9 + $0x1], 1 }

</bundles_post_ra>
